<compile_context>
chip_gen: v6e
topology: v6e:2x2x1
jax: 0.10.0
libtpu: 0.0.40
codegen_flags: <defaults>
</compile_context>

<pallas_src>
import functools
import math

import jax
import jax.numpy as jnp
from jax.experimental import pallas as pl
from jax.experimental.pallas import tpu as pltpu

LANES = 128
SUBLANES = 8
EPS = 1e-7
LOG_EPS = math.log(EPS)
LOG_1M_EPS = math.log(1.0 - EPS)


def _int_pow(x, p):
    """x**p as repeated VPU multiplies for integer p; jnp.power otherwise."""
    if isinstance(p, int) or (isinstance(p, float) and float(p).is_integer()):
        p = int(p)
        if p < 0:
            return 1.0 / _int_pow(x, -p)
        if p == 0:
            return jnp.ones_like(x)
        result = None
        base = x
        while p:
            if p & 1:
                result = base if result is None else result * base
            p >>= 1
            if p:
                base = base * base
        return result
    return jnp.power(x, float(p))  # non-integer exponent: keep EUP pow


def _focal_kernel(pred_ref, gt_ref,
                  pos_out_ref, neg_out_ref, npos_out_ref,
                  pos_acc, neg_acc, npos_acc,
                  *, a, b, use_sigmoid, n_valid):
    p = pl.program_id(0)            # parallel shard axis (megacore)
    i = pl.program_id(1)            # arbitrary reduction axis
    n_steps = pl.num_programs(1)
    block_rows, lanes = pred_ref.shape

    @pl.when(i == 0)
    def _():
        pos_acc[...] = jnp.zeros_like(pos_acc)
        neg_acc[...] = jnp.zeros_like(neg_acc)
        npos_acc[...] = jnp.zeros_like(npos_acc)

    pred = pred_ref[...]
    gt = gt_ref[...]

    # Validity mask rebuilt in-kernel from the static element count
    # (no constant-1 mask streamed from HBM). Only the padded tail masks off.
    block_base = (p * n_steps + i) * (block_rows * lanes)
    row_ids = jax.lax.broadcasted_iota(jnp.int32, (block_rows, lanes), 0)
    col_ids = jax.lax.broadcasted_iota(jnp.int32, (block_rows, lanes), 1)
    flat_idx = block_base + row_ids * lanes + col_ids
    mask = (flat_idx < n_valid).astype(jnp.float32)

    pos_inds = jnp.where(gt > 0.99, mask, 0.0)
    neg_inds = jnp.where(gt < 0.99, mask, 0.0)
    neg_w = _int_pow(1.0 - gt, b)

    if use_sigmoid:
        # log-sigmoid identities (numerically stable, minimal EUP work):
        #   softplus(-x)        = log(1 + exp(-x))
        #   log(sigmoid(x))     = -softplus(-x)
        #   log(1 - sigmoid(x)) = -x - softplus(-x)
        # Clips reproduce PyTorch's clamp(sigmoid(x), 1e-7, 1-1e-7) semantics.
        sp = jnp.maximum(-pred, 0.0) + jnp.log(1.0 + jnp.exp(-jnp.abs(pred)))
        log_c = jnp.clip(-sp, LOG_EPS, LOG_1M_EPS)
        log_1mc = jnp.clip(-pred - sp, LOG_EPS, LOG_1M_EPS)
        c = jnp.clip(jnp.exp(-sp), EPS, 1.0 - EPS)
    else:
        c = jnp.clip(pred, EPS, 1.0 - EPS)
        log_c = jnp.log(c)
        log_1mc = jnp.log(1.0 - c)

    pos_loss = log_c * _int_pow(1.0 - c, a) * pos_inds
    neg_loss = log_1mc * _int_pow(c, a) * neg_w * neg_inds

    # Hot loop: pure elementwise VPU accumulation (no per-step XLU reduce,
    # no serialized scalar read-modify-write).
    pos_acc[...] += pos_loss
    neg_acc[...] += neg_loss
    npos_acc[...] += pos_inds

    # Single reduction to an (8, 128) partial per shard on the last step.
    @pl.when(i == n_steps - 1)
    def _():
        pos_out_ref[...] = jnp.reshape(pos_acc[...], (-1, SUBLANES, lanes)).sum(axis=0)
        neg_out_ref[...] = jnp.reshape(neg_acc[...], (-1, SUBLANES, lanes)).sum(axis=0)
        npos_out_ref[...] = jnp.reshape(npos_acc[...], (-1, SUBLANES, lanes)).sum(axis=0)


def focal_loss(predict, gt, *, sigmoid=True, a=2, b=4,
               block_rows=1024, num_shards=2):
    """Pallas implementation of FocalLoss.forward(predict, gt)."""
    # Crop predict to gt spatial size (NCHW semantics) - plain-JAX glue.
    pred = predict[:, :, : gt.shape[2], : gt.shape[3]]

    pred_flat = pred.reshape(-1)
    gt_flat = gt.reshape(-1)
    if pred_flat.dtype != jnp.float32:
        pred_flat = pred_flat.astype(jnp.float32)
    if gt_flat.dtype != jnp.float32:
        gt_flat = gt_flat.astype(jnp.float32)
    n = pred_flat.shape[0]

    # Row geometry: lane-major slab (rows, 128); rows padded to a multiple of
    # num_shards * block_rows so the grid divides evenly.
    block_rows = max(SUBLANES, (int(block_rows) // SUBLANES) * SUBLANES)
    rows_min = -(-n // LANES)
    rows_min = -(-rows_min // SUBLANES) * SUBLANES
    block_rows = min(block_rows, rows_min)
    shard_block = num_shards * block_rows
    rows = -(-rows_min // shard_block) * shard_block
    steps_per_shard = rows // shard_block

    n_pad = rows * LANES
    pad = n_pad - n
    if pad:
        pred_flat = jnp.pad(pred_flat, (0, pad))
        gt_flat = jnp.pad(gt_flat, (0, pad))
    pred2d = pred_flat.reshape(rows, LANES)
    gt2d = gt_flat.reshape(rows, LANES)

    kernel = functools.partial(
        _focal_kernel, a=a, b=b, use_sigmoid=sigmoid, n_valid=n)

    tile_spec = pl.BlockSpec((block_rows, LANES),
                             lambda p, i: (p * steps_per_shard + i, 0))
    out_spec = pl.BlockSpec((SUBLANES, LANES), lambda p, i: (p, 0))
    partial_shape = jax.ShapeDtypeStruct((num_shards * SUBLANES, LANES),
                                         jnp.float32)

    cost = pl.CostEstimate(
        flops=int(25 * n_pad),
        transcendentals=int(3 * n_pad),
        bytes_accessed=int(2 * n_pad * 4),
    )

    pos_p, neg_p, npos_p = pl.pallas_call(
        kernel,
        out_shape=(partial_shape, partial_shape, partial_shape),
        grid_spec=pltpu.PrefetchScalarGridSpec(
            num_scalar_prefetch=0,
            grid=(num_shards, steps_per_shard),
            in_specs=[tile_spec, tile_spec],
            out_specs=[out_spec, out_spec, out_spec],
            scratch_shapes=[pltpu.VMEM((block_rows, LANES), jnp.float32),
                            pltpu.VMEM((block_rows, LANES), jnp.float32),
                            pltpu.VMEM((block_rows, LANES), jnp.float32)],
        ),
        compiler_params=pltpu.CompilerParams(
            dimension_semantics=("parallel", "arbitrary")),
        cost_estimate=cost,
    )(pred2d, gt2d)

    pos_sum = jnp.sum(pos_p)
    neg_sum = jnp.sum(neg_p)
    num_pos = jnp.sum(npos_p)

    safe_den = jnp.where(num_pos == 0, 1.0, num_pos)
    return jnp.where(num_pos == 0, -neg_sum, -(pos_sum + neg_sum) / safe_den)


def focal_loss_ref(predict, gt, *, sigmoid=True, a=2, b=4):
    """Pure-JAX reference mirroring the PyTorch forward."""
    pred = predict[:, :, : gt.shape[2], : gt.shape[3]].astype(jnp.float32)
    gt = gt.astype(jnp.float32)
    pos_inds = (gt > 0.99).astype(jnp.float32)
    neg_inds = (gt < 0.99).astype(jnp.float32)
    neg_weights = jnp.power(1.0 - gt, float(b))
    c_map = jax.nn.sigmoid(pred) if sigmoid else pred
    c_map = jnp.clip(c_map, EPS, 1.0 - EPS)
    pos_loss = jnp.sum(jnp.log(c_map) * jnp.power(1.0 - c_map, float(a)) * pos_inds)
    neg_loss = jnp.sum(jnp.log(1.0 - c_map) * jnp.power(c_map, float(a))
                       * neg_weights * neg_inds)
    num_pos = jnp.sum(pos_inds)
    return jnp.where(num_pos == 0,
                     -neg_loss,
                     -(pos_loss + neg_loss) / jnp.where(num_pos == 0, 1.0, num_pos))


if __name__ == "__main__":
    key = jax.random.PRNGKey(0)
    k1, k2, k3, k4 = jax.random.split(key, 4)

    # predict is spatially larger than gt to exercise the crop.
    predict = jax.random.normal(k1, (2, 4, 18, 18), dtype=jnp.float32)
    gt = jax.random.uniform(k2, (2, 4, 16, 16), dtype=jnp.float32)
    # Force a few exact positives (gt == 1.0) like a CenterNet heatmap.
    gt = gt.at[0, 0, 3, 5].set(1.0).at[1, 2, 7, 9].set(1.0).at[0, 3, 0, 0].set(1.0)

    loss = jax.block_until_ready(focal_loss(predict, gt, sigmoid=True, a=2, b=4))
    ref = focal_loss_ref(predict, gt, sigmoid=True, a=2, b=4)
    assert jnp.allclose(loss, ref, rtol=1e-5, atol=1e-5), (loss, ref)

    # Second check: small block_rows forces a multi-step reduction grid so
    # the init / accumulate / finalize pipeline path is exercised.
    predict2 = jax.random.normal(k3, (2, 4, 40, 40), dtype=jnp.float32)
    gt2 = jax.random.uniform(k4, (2, 4, 36, 36), dtype=jnp.float32)
    gt2 = gt2.at[1, 1, 10, 20].set(1.0).at[0, 2, 5, 5].set(1.0)
    loss2 = jax.block_until_ready(focal_loss(predict2, gt2, block_rows=8))
    ref2 = focal_loss_ref(predict2, gt2)
    assert jnp.allclose(loss2, ref2, rtol=1e-5, atol=1e-5), (loss2, ref2)

    print("KERNEL_OK")
</pallas_src>

<mosaic_0001>
module attributes {stable_mosaic.version = 11 : i64} {
  func.func @_focal_kernel(%arg0: i32, %arg1: i32, %arg2: memref<16x128xf32, #tpu.memory_space<vmem>>, %arg3: memref<16x128xf32, #tpu.memory_space<vmem>>, %arg4: memref<8x128xf32, #tpu.memory_space<vmem>>, %arg5: memref<8x128xf32, #tpu.memory_space<vmem>>, %arg6: memref<8x128xf32, #tpu.memory_space<vmem>>, %arg7: memref<16x128xf32, #tpu.memory_space<vmem>>, %arg8: memref<16x128xf32, #tpu.memory_space<vmem>>, %arg9: memref<16x128xf32, #tpu.memory_space<vmem>>) attributes {dimension_semantics = [#tpu.dimension_semantics<parallel>, #tpu.dimension_semantics<arbitrary>], iteration_bounds = array<i64: 2, 1>, scalar_prefetch = 0 : i64, scratch_operands = 3 : i64, tpu.core_type = #tpu.core_type<tc>, window_params = [{transform_indices = @transform_0, window_bounds = array<i64: 16, 128>}, {transform_indices = @transform_1, window_bounds = array<i64: 16, 128>}, {transform_indices = @transform_2, window_bounds = array<i64: 8, 128>}, {transform_indices = @transform_3, window_bounds = array<i64: 8, 128>}, {transform_indices = @transform_4, window_bounds = array<i64: 8, 128>}]} {
    %c0_i32 = arith.constant 0 : i32
    %0 = arith.cmpi eq, %arg1, %c0_i32 : i32
    %1 = arith.extui %0 : i1 to i32
    %c0_i32_0 = arith.constant 0 : i32
    %2 = arith.cmpi ne, %1, %c0_i32_0 : i32
    scf.if %2 {
      %cst_37 = arith.constant 0.000000e+00 : f32
      %84 = vector.broadcast %cst_37 : f32 to vector<16x128xf32>
      %c0_38 = arith.constant 0 : index
      %c0_39 = arith.constant 0 : index
      %85 = vector.load %arg7[%c0_38, %c0_39] : memref<16x128xf32, #tpu.memory_space<vmem>>, vector<16x128xf32>
      tpu.vector_store %arg7[%c0_38, %c0_39], %84 {strides = array<i32>} : memref<16x128xf32, #tpu.memory_space<vmem>>, vector<16x128xf32>,
      %cst_40 = arith.constant 0.000000e+00 : f32
      %86 = vector.broadcast %cst_40 : f32 to vector<16x128xf32>
      %c0_41 = arith.constant 0 : index
      %c0_42 = arith.constant 0 : index
      %87 = vector.load %arg8[%c0_41, %c0_42] : memref<16x128xf32, #tpu.memory_space<vmem>>, vector<16x128xf32>
      tpu.vector_store %arg8[%c0_41, %c0_42], %86 {strides = array<i32>} : memref<16x128xf32, #tpu.memory_space<vmem>>, vector<16x128xf32>,
      %cst_43 = arith.constant 0.000000e+00 : f32
      %88 = vector.broadcast %cst_43 : f32 to vector<16x128xf32>
      %c0_44 = arith.constant 0 : index
      %c0_45 = arith.constant 0 : index
      %89 = vector.load %arg9[%c0_44, %c0_45] : memref<16x128xf32, #tpu.memory_space<vmem>>, vector<16x128xf32>
      tpu.vector_store %arg9[%c0_44, %c0_45], %88 {strides = array<i32>} : memref<16x128xf32, #tpu.memory_space<vmem>>, vector<16x128xf32>,
    } else {
    }
    %c0 = arith.constant 0 : index
    %c0_1 = arith.constant 0 : index
    %3 = vector.load %arg2[%c0, %c0_1] : memref<16x128xf32, #tpu.memory_space<vmem>>, vector<16x128xf32>
    %c0_2 = arith.constant 0 : index
    %c0_3 = arith.constant 0 : index
    %4 = vector.load %arg3[%c0_2, %c0_3] : memref<16x128xf32, #tpu.memory_space<vmem>>, vector<16x128xf32>
    %c1_i32 = arith.constant 1 : i32
    %5 = arith.muli %arg0, %c1_i32 : i32
    %6 = arith.addi %5, %arg1 : i32
    %c2048_i32 = arith.constant 2048 : i32
    %7 = arith.muli %6, %c2048_i32 : i32
    %8 = tpu.iota {dimensions = array<i32: 0>} : vector<16x128xi32>
    %9 = tpu.iota {dimensions = array<i32: 1>} : vector<16x128xi32>
    %c128_i32 = arith.constant 128 : i32
    %10 = vector.broadcast %c128_i32 : i32 to vector<16x128xi32>
    %11 = arith.muli %8, %10 : vector<16x128xi32>
    %12 = vector.broadcast %7 : i32 to vector<16x128xi32>
    %13 = arith.addi %12, %11 : vector<16x128xi32>
    %14 = arith.addi %13, %9 : vector<16x128xi32>
    %c2048_i32_4 = arith.constant 2048 : i32
    %15 = vector.broadcast %c2048_i32_4 : i32 to vector<16x128xi32>
    %16 = arith.cmpi slt, %14, %15 : vector<16x128xi32>
    %17 = arith.extui %16 : vector<16x128xi1> to vector<16x128xi32>
    %18 = arith.sitofp %17 : vector<16x128xi32> to vector<16x128xf32>
    %cst = arith.constant 9.900000e-01 : f32
    %19 = vector.broadcast %cst : f32 to vector<16x128xf32>
    %20 = arith.cmpf ogt, %4, %19 : vector<16x128xf32>
    %cst_5 = arith.constant 0.000000e+00 : f32
    %21 = vector.broadcast %cst_5 : f32 to vector<16x128xf32>
    %22 = arith.select %20, %18, %21 : vector<16x128xi1>, vector<16x128xf32>
    %cst_6 = arith.constant 9.900000e-01 : f32
    %23 = vector.broadcast %cst_6 : f32 to vector<16x128xf32>
    %24 = arith.cmpf olt, %4, %23 : vector<16x128xf32>
    %cst_7 = arith.constant 0.000000e+00 : f32
    %25 = vector.broadcast %cst_7 : f32 to vector<16x128xf32>
    %26 = arith.select %24, %18, %25 : vector<16x128xi1>, vector<16x128xf32>
    %cst_8 = arith.constant 1.000000e+00 : f32
    %27 = vector.broadcast %cst_8 : f32 to vector<16x128xf32>
    %28 = arith.subf %27, %4 : vector<16x128xf32>
    %29 = arith.mulf %28, %28 : vector<16x128xf32>
    %30 = arith.mulf %29, %29 : vector<16x128xf32>
    %cst_9 = arith.constant 0.000000e+00 : f32
    %31 = vector.broadcast %cst_9 : f32 to vector<16x128xf32>
    %32 = arith.subf %31, %3 : vector<16x128xf32>
    %cst_10 = arith.constant 0.000000e+00 : f32
    %33 = vector.broadcast %cst_10 : f32 to vector<16x128xf32>
    %34 = arith.maximumf %32, %33 : vector<16x128xf32>
    %35 = math.absf %3 : vector<16x128xf32>
    %cst_11 = arith.constant 0.000000e+00 : f32
    %36 = vector.broadcast %cst_11 : f32 to vector<16x128xf32>
    %37 = arith.subf %36, %35 : vector<16x128xf32>
    %38 = math.exp %37 : vector<16x128xf32>
    %cst_12 = arith.constant 1.000000e+00 : f32
    %39 = vector.broadcast %cst_12 : f32 to vector<16x128xf32>
    %40 = arith.addf %39, %38 : vector<16x128xf32>
    %41 = math.log %40 : vector<16x128xf32>
    %42 = arith.addf %34, %41 : vector<16x128xf32>
    %cst_13 = arith.constant 0.000000e+00 : f32
    %43 = vector.broadcast %cst_13 : f32 to vector<16x128xf32>
    %44 = arith.subf %43, %42 : vector<16x128xf32>
    %cst_14 = arith.constant -16.1180954 : f32
    %cst_15 = arith.constant -1.00000008E-7 : f32
    %45 = vector.broadcast %cst_14 : f32 to vector<16x128xf32>
    %46 = arith.maximumf %45, %44 : vector<16x128xf32>
    %47 = vector.broadcast %cst_15 : f32 to vector<16x128xf32>
    %48 = arith.minimumf %47, %46 : vector<16x128xf32>
    %cst_16 = arith.constant 0.000000e+00 : f32
    %49 = vector.broadcast %cst_16 : f32 to vector<16x128xf32>
    %50 = arith.subf %49, %3 : vector<16x128xf32>
    %51 = arith.subf %50, %42 : vector<16x128xf32>
    %cst_17 = arith.constant -16.1180954 : f32
    %cst_18 = arith.constant -1.00000008E-7 : f32
    %52 = vector.broadcast %cst_17 : f32 to vector<16x128xf32>
    %53 = arith.maximumf %52, %51 : vector<16x128xf32>
    %54 = vector.broadcast %cst_18 : f32 to vector<16x128xf32>
    %55 = arith.minimumf %54, %53 : vector<16x128xf32>
    %cst_19 = arith.constant 0.000000e+00 : f32
    %56 = vector.broadcast %cst_19 : f32 to vector<16x128xf32>
    %57 = arith.subf %56, %42 : vector<16x128xf32>
    %58 = math.exp %57 : vector<16x128xf32>
    %cst_20 = arith.constant 1.000000e-07 : f32
    %cst_21 = arith.constant 0.99999988 : f32
    %59 = vector.broadcast %cst_20 : f32 to vector<16x128xf32>
    %60 = arith.maximumf %59, %58 : vector<16x128xf32>
    %61 = vector.broadcast %cst_21 : f32 to vector<16x128xf32>
    %62 = arith.minimumf %61, %60 : vector<16x128xf32>
    %cst_22 = arith.constant 1.000000e+00 : f32
    %63 = vector.broadcast %cst_22 : f32 to vector<16x128xf32>
    %64 = arith.subf %63, %62 : vector<16x128xf32>
    %65 = arith.mulf %64, %64 : vector<16x128xf32>
    %66 = arith.mulf %48, %65 : vector<16x128xf32>
    %67 = arith.mulf %66, %22 : vector<16x128xf32>
    %68 = arith.mulf %62, %62 : vector<16x128xf32>
    %69 = arith.mulf %55, %68 : vector<16x128xf32>
    %70 = arith.mulf %69, %30 : vector<16x128xf32>
    %71 = arith.mulf %70, %26 : vector<16x128xf32>
    %c0_23 = arith.constant 0 : index
    %c0_24 = arith.constant 0 : index
    %72 = vector.load %arg7[%c0_23, %c0_24] : memref<16x128xf32, #tpu.memory_space<vmem>>, vector<16x128xf32>
    %73 = arith.addf %72, %67 : vector<16x128xf32>
    %c0_25 = arith.constant 0 : index
    %c0_26 = arith.constant 0 : index
    %74 = vector.load %arg7[%c0_25, %c0_26] : memref<16x128xf32, #tpu.memory_space<vmem>>, vector<16x128xf32>
    tpu.vector_store %arg7[%c0_25, %c0_26], %73 {strides = array<i32>} : memref<16x128xf32, #tpu.memory_space<vmem>>, vector<16x128xf32>,
    %c0_27 = arith.constant 0 : index
    %c0_28 = arith.constant 0 : index
    %75 = vector.load %arg8[%c0_27, %c0_28] : memref<16x128xf32, #tpu.memory_space<vmem>>, vector<16x128xf32>
    %76 = arith.addf %75, %71 : vector<16x128xf32>
    %c0_29 = arith.constant 0 : index
    %c0_30 = arith.constant 0 : index
    %77 = vector.load %arg8[%c0_29, %c0_30] : memref<16x128xf32, #tpu.memory_space<vmem>>, vector<16x128xf32>
    tpu.vector_store %arg8[%c0_29, %c0_30], %76 {strides = array<i32>} : memref<16x128xf32, #tpu.memory_space<vmem>>, vector<16x128xf32>,
    %c0_31 = arith.constant 0 : index
    %c0_32 = arith.constant 0 : index
    %78 = vector.load %arg9[%c0_31, %c0_32] : memref<16x128xf32, #tpu.memory_space<vmem>>, vector<16x128xf32>
    %79 = arith.addf %78, %22 : vector<16x128xf32>
    %c0_33 = arith.constant 0 : index
    %c0_34 = arith.constant 0 : index
    %80 = vector.load %arg9[%c0_33, %c0_34] : memref<16x128xf32, #tpu.memory_space<vmem>>, vector<16x128xf32>
    tpu.vector_store %arg9[%c0_33, %c0_34], %79 {strides = array<i32>} : memref<16x128xf32, #tpu.memory_space<vmem>>, vector<16x128xf32>,
    %c0_i32_35 = arith.constant 0 : i32
    %81 = arith.cmpi eq, %arg1, %c0_i32_35 : i32
    %82 = arith.extui %81 : i1 to i32
    %c0_i32_36 = arith.constant 0 : i32
    %83 = arith.cmpi ne, %82, %c0_i32_36 : i32
    scf.if %83 {
      %c0_37 = arith.constant 0 : index
      %c0_38 = arith.constant 0 : index
      %84 = vector.load %arg7[%c0_37, %c0_38] : memref<16x128xf32, #tpu.memory_space<vmem>>, vector<16x128xf32>
      %85 = vector.shape_cast %84 : vector<16x128xf32> to vector<2x8x128xf32>
      %cst_39 = arith.constant dense<0.000000e+00> : vector<8x128xf32>
      %86 = vector.multi_reduction <add>, %85, %cst_39 [0] : vector<2x8x128xf32> to vector<8x128xf32>
      %c0_40 = arith.constant 0 : index
      %c0_41 = arith.constant 0 : index
      %87 = vector.load %arg4[%c0_40, %c0_41] : memref<8x128xf32, #tpu.memory_space<vmem>>, vector<8x128xf32>
      tpu.vector_store %arg4[%c0_40, %c0_41], %86 {strides = array<i32>} : memref<8x128xf32, #tpu.memory_space<vmem>>, vector<8x128xf32>,
      %c0_42 = arith.constant 0 : index
      %c0_43 = arith.constant 0 : index
      %88 = vector.load %arg8[%c0_42, %c0_43] : memref<16x128xf32, #tpu.memory_space<vmem>>, vector<16x128xf32>
      %89 = vector.shape_cast %88 : vector<16x128xf32> to vector<2x8x128xf32>
      %cst_44 = arith.constant dense<0.000000e+00> : vector<8x128xf32>
      %90 = vector.multi_reduction <add>, %89, %cst_44 [0] : vector<2x8x128xf32> to vector<8x128xf32>
      %c0_45 = arith.constant 0 : index
      %c0_46 = arith.constant 0 : index
      %91 = vector.load %arg5[%c0_45, %c0_46] : memref<8x128xf32, #tpu.memory_space<vmem>>, vector<8x128xf32>
      tpu.vector_store %arg5[%c0_45, %c0_46], %90 {strides = array<i32>} : memref<8x128xf32, #tpu.memory_space<vmem>>, vector<8x128xf32>,
      %c0_47 = arith.constant 0 : index
      %c0_48 = arith.constant 0 : index
      %92 = vector.load %arg9[%c0_47, %c0_48] : memref<16x128xf32, #tpu.memory_space<vmem>>, vector<16x128xf32>
      %93 = vector.shape_cast %92 : vector<16x128xf32> to vector<2x8x128xf32>
      %cst_49 = arith.constant dense<0.000000e+00> : vector<8x128xf32>
      %94 = vector.multi_reduction <add>, %93, %cst_49 [0] : vector<2x8x128xf32> to vector<8x128xf32>
      %c0_50 = arith.constant 0 : index
      %c0_51 = arith.constant 0 : index
      %95 = vector.load %arg6[%c0_50, %c0_51] : memref<8x128xf32, #tpu.memory_space<vmem>>, vector<8x128xf32>
      tpu.vector_store %arg6[%c0_50, %c0_51], %94 {strides = array<i32>} : memref<8x128xf32, #tpu.memory_space<vmem>>, vector<8x128xf32>,
    } else {
    }
    return
  }
  func.func @transform_0(%arg0: i32, %arg1: i32) -> (i32, i32) {
    %c1_i32 = arith.constant 1 : i32
    %0 = arith.muli %arg0, %c1_i32 : i32
    %1 = arith.addi %0, %arg1 : i32
    %c0_i32 = arith.constant 0 : i32
    %c0_i32_0 = arith.constant 0 : i32
    return %1, %c0_i32 : i32, i32
  }
  func.func @transform_1(%arg0: i32, %arg1: i32) -> (i32, i32) {
    %c1_i32 = arith.constant 1 : i32
    %0 = arith.muli %arg0, %c1_i32 : i32
    %1 = arith.addi %0, %arg1 : i32
    %c0_i32 = arith.constant 0 : i32
    %c0_i32_0 = arith.constant 0 : i32
    return %1, %c0_i32 : i32, i32
  }
  func.func @transform_2(%arg0: i32, %arg1: i32) -> (i32, i32) {
    %c0_i32 = arith.constant 0 : i32
    %c0_i32_0 = arith.constant 0 : i32
    return %arg0, %c0_i32 : i32, i32
  }
  func.func @transform_3(%arg0: i32, %arg1: i32) -> (i32, i32) {
    %c0_i32 = arith.constant 0 : i32
    %c0_i32_0 = arith.constant 0 : i32
    return %arg0, %c0_i32 : i32, i32
  }
  func.func @transform_4(%arg0: i32, %arg1: i32) -> (i32, i32) {
    %c0_i32 = arith.constant 0 : i32
    %c0_i32_0 = arith.constant 0 : i32
    return %arg0, %c0_i32 : i32, i32
  }
}

</mosaic_0001>

<bundles_post_ra>
// kernel: tpu_custom_call.1
= control target key start
LH: loop header
LB: loop body
LE: loop exit
PB: predicated region body
PF: predicated region fallthrough
CT: control target
= control target key end

     0   :  { %s1270_s0 = inlined_call_operand.hbm [shape: f32[32,128], index: 0, kind: input, shape index: {}]   ;;  %s1271_s1 = inlined_call_operand.hbm [shape: f32[32,128], index: 1, kind: input, shape index: {}]   ;;  %s1272_s2 = inlined_call_operand.hbm [shape: f32[16,128], index: 2, kind: output, shape index: {0}]   ;;  %s1273_s3 = inlined_call_operand.hbm [shape: f32[16,128], index: 3, kind: output, shape index: {1}]   ;;  %s1274_s4 = inlined_call_operand.hbm [shape: f32[16,128], index: 4, kind: output, shape index: {2}]  }
   0x1   :  { %1277 = sst [smem:[#allocation20_spill]] %s1270_s0 }
   0x2   :  { %10 = vsyncpa [#allocation6], 0 }
   0x3   :  { %12 = vsyncpa [#allocation6 + $0x1], 0 }
   0x4   :  { %13 = vsyncpa [#allocation9], 0 }
   0x5   :  { %15 = vsyncpa [#allocation9 + $0x1], 0 }
   0x6   :  { %16 = vsyncpa [#allocation7], 0 }
   0x7   :  { %18 = vsyncpa [#allocation7 + $0x1], 0 }
   0x8   :  { %19 = vsyncpa [#allocation12], 0 }
   0x9   :  { %21 = vsyncpa [#allocation12 + $0x1], 0  ;;  %s999_s15 = smov 0   ;;  %s1001_s16 = smov 0  }
   0xa   :  { %s1003_s17 = smov 0   ;;  %s1005_s18 = smov 0  }
   0xb   :  { %s1007_s19 = smov 0   ;;  %s1009_s20 = smov 0  }
   0xc LB: > { %s1030_s21 = sadd.s32 4294967295, %s964_s20   ;;  %s1275_s22 = sadd.s32 4294967294, %s964_s20   ;;  %s964_s20 = sphi %s1009_s20, %s27_s20   ;;  %s960_s19 = sphi %s1007_s19, %s1294_s19   ;;  %s956_s18 = sphi %s1005_s18, %s1293_s18   ;;  %s952_s17 = sphi %s1003_s17, %s1292_s17   ;;  %s948_s16 = sphi %s1001_s16, %s1291_s16   ;;  %s944_s15 = sphi %s999_s15, %s1290_s15  }
   0xd   : > { %s39_s23 = sadd.s32 1, %s960_s19  ;;  %s48_s24 = sadd.s32 1, %s952_s17 }
   0xe   : > { %p41_p0 = scmp.ge.s32.totalorder %s39_s23, 2  ;;  %p55_p1 = scmp.ne.s32.totalorder %s952_s17, %s948_s16 }
   0xf   : > { %p56_p2 = scmp.eq.s32.totalorder %s964_s20, 0  ;;  %p61_p3 = scmp.ne.s32.totalorder %s948_s16, %s944_s15 }
  0x10   : > { %s1296_s23 = smov (%p41_p0, %s39_s23), 0  ;;  %p62_p5 = scmp.eq.s32.totalorder %s1030_s21, 0 }
  0x11   : > { %1278 = sst [smem:[#allocation18_spill]] %s1296_s23  ;;  %p1042_p4 = por %p56_p2, %p55_p1 }
  0x12   : > { %s45_s26 = ssub.s32 %s960_s19, %s1296_s23  ;;  %p113_p6 = scmp.eq.s32.totalorder %s1030_s21, 1 }
  0x13   : > { %p46_p7 = scmp.eq.s32.totalorder %s45_s26, 0  ;;  %p1050_p8 = por %p62_p5, %p61_p3 }
  0x14   : > { %p1054_p9 = por %p113_p6, %p55_p1  ;;  %p119_p10 = scmp.eq.s32.totalorder %s1275_s22, 1 }
  0x15   : > { %s1061_s29 = scalar_select %p46_p7, %s952_s17, %s48_s24  }
  0x16   : > { %p1063_p11 = por %p119_p10, %p61_p3  ;;  %p650_p12 = scmp.ge.s32.totalorder %s964_s20, 2 }
  0x17   : > { %1282 = sst [smem:[#allocation19_spill]] %s1061_s29  ;;  %p703_p13 = scmp.lt.s32.totalorder %s964_s20, 2 }
  0x18   : > { %s1070_s5 = sand.u32 1, %s952_s17   ;;  %s674_s7 = sshll.u32 %s960_s19, 8 }
  0x19   : > { %s651_s6 = sshll.u32 %s1070_s5, 4  ;;  %s1284_s0 = sld [smem:[#allocation20_spill]] }
  0x1a   : > { %s195_s11 = scalar_lea.vmem [#allocation5], %s651_s6  ;;  %p1083_p0 = pnand %p703_p13, %p1042_p4 }
  0x1b   : > { %s203_s12 = sshll.u32 %s195_s11, 4  ;;  %p657_p1 = scmp.ge.s32.totalorder %s964_s20, 1  ;;  %s204_s12 = int_to_ptr.vmem [resolvable:$true] %s203_s12 }
  0x1c   : > { %s192_s14 = scalar_lea.sflag [#allocation6], %s1070_s5  ;;  %p770_p2 = pneg %p1083_p0 }
  0x1d   : > { %s781_s24 = scalar_lea.vmem %s204_s12, 256  ;;  %s966_s26 = smov [#allocation5]  }
  0x1e   : > { %p782_p3 = scmp.ne.s32.totalorder %s204_s12, %s781_s24  ;;  %s786_s8 = sshll.u32 %s966_s26, 4  ;;  %s787_s8 = int_to_ptr.vmem [resolvable:$false] %s786_s8 }
  0x1f   : > { %s202_s10 = scalar_lea.hbm %s1284_s0, %s674_s7  ;;  %s788_s25 = scalar_lea.vmem %s787_s8, 512 }
  0x20   : > { %p784_p5 = pnand %p782_p3, %p770_p2  ;;  %p789_p4 = scmp.lt.s32.totalorder %s204_s12, %s787_s8 }
  0x21   : > { %p790_p7 = scmp.lt.s32.totalorder %s788_s25, %s781_s24 }
  0x22   : > { %p785_p6 = pneg %p784_p5 }
  0x23   : > { %p791_p10 = por %p790_p7, %p789_p4 }
  0x25   : > { %p792_p13 = pnand %p791_p10, %p785_p6 }
  0x27   : > { %795 = shalt.err (!%p792_p13)
}
  0x28   : > { %s967_s9 = smov 128   ;;  %s968_s11 = smov 8  }
  0x29   : > { %689 = dma.hbm_to_vmem [thread:$0]  (!%p1083_p0), %s202_s10, 256, %s204_s12, %s192_s14, %s967_s9, %s967_s9, %s968_s11  }
  0x2a   : > { %p233_p3 = scmp.lt.s32.totalorder %s964_s20, 3  ;;  %s224_s24 = scalar_lea.hbm %s1271_s1, %s674_s7 }
  0x2b   : > { %s217_s25 = scalar_lea.vmem [#allocation8], %s651_s6  ;;  %s214_s23 = scalar_lea.sflag [#allocation9], %s1070_s5 }
  0x2c   : > { %p1104_p5 = pnand %p657_p1, %p233_p3  ;;  %s225_s0 = sshll.u32 %s217_s25, 4  ;;  %s226_s0 = int_to_ptr.vmem [resolvable:$true] %s225_s0 }
  0x2d   : > { %s809_s29 = scalar_lea.vmem %s226_s0, 256  ;;  %s969_s10 = smov [#allocation8]  }
  0x2e   : > { %p810_p6 = scmp.ne.s32.totalorder %s226_s0, %s809_s29  ;;  %s814_s12 = sshll.u32 %s969_s10, 4  ;;  %s815_s12 = int_to_ptr.vmem [resolvable:$false] %s814_s12 }
  0x2f   : > { %s816_s22 = scalar_lea.vmem %s815_s12, 512  ;;  %p817_p10 = scmp.lt.s32.totalorder %s226_s0, %s815_s12 }
  0x30   : > { %p812_p4 = pnand %p810_p6, %p770_p2  ;;  %p818_p1 = scmp.lt.s32.totalorder %s816_s22, %s809_s29 }
  0x32   : > { %p813_p7 = pneg %p812_p4  ;;  %p819_p13 = por %p818_p1, %p817_p10 }
  0x34   : > { %p820_p3 = pnand %p819_p13, %p813_p7 }
  0x36   : > { %823 = shalt.err (!%p820_p3)
}
  0x37   : > { %692 = dma.hbm_to_vmem [thread:$0]  (!%p1083_p0), %s224_s24, 256, %s226_s0, %s214_s23, %s967_s9, %s967_s9, %s968_s11  }
  0x38   : > { %237 = sbr.rel (%p1104_p5) target bundleno = 194 (0xc2), region = 28  ;;  %s1119_s5 = sand.u32 (!%p1104_p5), 1, %s948_s16  }
  0x39   : > { %s658_s6 = sshll.u32 (!%p1104_p5), %s1119_s5, 4  ;;  %s240_s7 = scalar_lea.sflag (!%p1104_p5), [#allocation6], %s1119_s5 }
  0x3a   : > { %s243_s14 = scalar_lea.vmem (!%p1104_p5), [#allocation5], %s658_s6 }
  0x3d   : > { %927 = dma.done.wait (%p1050_p8), %s240_s7, 256  }
  0x3e   : > { %929 = vsyncadd (%p1050_p8), %s240_s7, 4294967040  ;;  %s249_s0 = scalar_lea.sflag [#allocation9], %s1119_s5  ;;  %s252_s23 = scalar_lea.vmem [#allocation8], %s658_s6 }
  0x3f   : > { %931 = dma.done.wait (%p1050_p8), %s249_s0, 256  }
  0x40   : > { %933 = vsyncadd (%p1050_p8), %s249_s0, 4294967040  ;;  %s663_s29 = sshll.u32 %s956_s18, 11  ;;  %v312_v0 = vlaneseq  ;;  %v306_v8 = vld [vmem:[%s243_s14] sm:$0xff]  ;;  %v307_v12 = vld [vmem:[%s243_s14 + $0x8] sm:$0xff]  ;;  %v970_v16 = vmov 0.0   ;;  %s1134_s27 = sshll.u32 %s1119_s5, 3 }
  0x41   : > { %v319_v2 = vstv %s663_s29  ;;  %v308_v9 = vld [vmem:[%s252_s23] sm:$0xff]  ;;  %v309_v13 = vld [vmem:[%s252_s23 + $0x8] sm:$0xff]  ;;  %v348_v15 = vand.u32 2147483647, %v306_v8  ;;  %v349_v19 = vand.u32 2147483647, %v307_v12 }
  0x42   : > { %v313_v1 = vshrl.u32 %v312_v0, 7  ;;  %v316_v4 = vand.u32 127, %v312_v0  ;;  %vm334_vm0 = vcmp.lt.f32.partialorder %v308_v9, 0.99  ;;  %vm335_vm2 = vcmp.lt.f32.partialorder %v309_v13, 0.99 }
  0x43   : > { %v350_v21 = vsub.f32 0.0, %v348_v15  ;;  %vm330_vm4 = vcmp.gt.f32.partialorder %v308_v9, 0.99  ;;  %v351_v23 = vsub.f32 0.0, %v349_v19  ;;  %vm331_vm5 = vcmp.gt.f32.partialorder %v309_v13, 0.99 }
  0x44   : > { %v314_v3 = vadd.s32 8, %v313_v1  ;;  %v317_v5 = vmul.u32 128, %v313_v1  ;;  %s291_s13 = scalar_lea.vmem [#allocation13], %s1134_s27  ;;  %v344_v33 = vsub.f32 0.0, %v306_v8  ;;  %v345_v34 = vsub.f32 0.0, %v307_v12  ;;  %s284_s9 = scalar_lea.vmem [#allocation11], %s1134_s27 }
  0x45   : > { %v352_v24 = vmul.f32 1.442695, %v350_v21  ;;  %v354_v27 = vmul.f32 1.442695, %v351_v23  ;;  %v338_v49 = vsub.f32 1.0, %v308_v9  ;;  %v339_v50 = vsub.f32 1.0, %v309_v13 }
  0x46   : > { %v318_v6 = vmul.u32 128, %v314_v3  ;;  %v320_v7 = vadd.s32 %v319_v2, %v317_v5  ;;  %v346_v35 = vmax.f32 %v344_v33, 0.0  ;;  %v347_v37 = vmax.f32 %v345_v34, 0.0  ;;  %s470_s11 = sshll.u32 %s284_s9, 4  ;;  %s277_s26 = scalar_lea.vmem [#allocation10], %s1134_s27  ;;  %s1156_s11 = int_to_ptr.vmem [resolvable:$true] %s470_s11 }
  0x47   : > { %756 = vpow2.f32 %v352_v24  ;;  %v340_v55 = vmul.f32 %v338_v49, %v338_v49  ;;  %v341_v58 = vmul.f32 %v339_v50, %v339_v50  ;;  %s457_s24 = sshll.u32 %s277_s26, 4  ;;  %s438_s8 = sand.u32 1, %s1030_s21   ;;  %s1159_s24 = int_to_ptr.vmem [resolvable:$true] %s457_s24 }
  0x48   : > { %v321_v10 = vadd.s32 %v319_v2, %v318_v6  ;;  %v322_v11 = vadd.s32 %v320_v7, %v316_v4  ;;  %758 = vpow2.f32 %v354_v27  ;;  %s669_s25 = sshll.u32 %s956_s18, 7  ;;  %s483_s10 = sshll.u32 %s291_s13, 4  ;;  %s1173_s10 = int_to_ptr.vmem [resolvable:$true] %s483_s10 }
  0x49   : > { %v342_v1 = vmul.f32 %v340_v55, %v340_v55  ;;  %v343_v5 = vmul.f32 %v341_v58, %v341_v58  ;;  %s1166_s18 = scalar_lea.hbm %s1273_s3, %s669_s25  ;;  %s1171_s7 = scalar_lea.hbm %s1272_s2, %s669_s25 }
  0x4a   : > { %v323_v14 = vadd.s32 %v321_v10, %v316_v4  ;;  %vm324_vm1 = vcmp.lt.s32.totalorder %v322_v11, 2048  ;;  %s1178_s23 = scalar_lea.hbm %s1274_s4, %s669_s25  ;;  %s1180_s29 = scalar_lea.sflag [#allocation12], %s438_s8 }
  0x4b   : > { %v664_v17 = vsel %vm324_vm1, 1.0, %v970_v16  ;;  %s824_s27 = scalar_lea.vmem %s1156_s11, 128 }
  0x4c   : > { %vm325_vm3 = vcmp.lt.s32.totalorder %v323_v14, 2048  ;;  %v1136_v18 = vsel %vm334_vm0, %v664_v17, 0.0  ;;  %v1140_v25 = vsel %vm330_vm4, %v664_v17, 0.0  ;;  %p825_p8 = scmp.ne.s32.totalorder %s1156_s11, %s824_s27 }
  0x4d   : > { %v665_v20 = vsel %vm325_vm3, 1.0, %v970_v16 }
  0x4e   : > { %v1138_v22 = vsel %vm335_vm2, %v665_v20, 0.0  ;;  %v1142_v26 = vsel %vm331_vm5, %v665_v20, 0.0  ;;  %p826_p0 = pnand %p825_p8, %p1054_p9 }
  0x4f   : > { %v431_v28 = vadd.f32 %v1142_v26, %v1140_v25 }
  0x50   : > { %p827_p2 = pneg %p826_p0 }
  0x51   : > { %432 = vst [vmem:[%s291_s13] sm:$0xff] %v431_v28  ;;  %s971_s13 = smov [#allocation11]  }
  0x52   : > { %s828_s12 = sshll.u32 %s971_s13, 4  ;;  %s829_s12 = int_to_ptr.vmem [resolvable:$false] %s828_s12 }
  0x53   : > { %s830_s22 = scalar_lea.vmem %s829_s12, 256  ;;  %p831_p5 = scmp.lt.s32.totalorder %s1156_s11, %s829_s12 }
  0x54   : > { %v757_v29 = vpop.eup %756  ;;  %p832_p6 = scmp.lt.s32.totalorder %s830_s22, %s824_s27 }
  0x55   : > { %v759_v30 = vpop.eup %758  ;;  %v356_v31 = vadd.f32 1.0, %v757_v29 }
  0x56   : > { %v357_v32 = vadd.f32 1.0, %v759_v30  ;;  %p833_p4 = por %p832_p6, %p831_p5 }
  0x57   : > { %760 = vlog2.f32 %v356_v31 }
  0x58   : > { %762 = vlog2.f32 %v357_v32  ;;  %p834_p7 = pnand %p833_p4, %p827_p2 }
  0x64   : > { %v761_v36 = vpop.eup %760 }
  0x65   : > { %v763_v38 = vpop.eup %762  ;;  %v359_v39 = vmul.f32 0.6931472, %v761_v36 }
  0x66   : > { %v361_v40 = vmul.f32 0.6931472, %v763_v38 }
  0x67   : > { %v362_v41 = vadd.f32 %v359_v39, %v346_v35 }
  0x68   : > { %v363_v42 = vadd.f32 %v361_v40, %v347_v37 }
  0x69   : > { %v364_v43 = vsub.f32 0.0, %v362_v41  ;;  %v370_v47 = vsub.f32 %v344_v33, %v362_v41 }
  0x6a   : > { %v365_v44 = vsub.f32 0.0, %v363_v42  ;;  %v371_v48 = vsub.f32 %v345_v34, %v363_v42 }
  0x6b   : > { %v376_v45 = vmul.f32 1.442695, %v364_v43  ;;  %v372_v51 = vmax.f32 %v370_v47, -16.118095  ;;  %v366_v57 = vmax.f32 %v364_v43, -16.118095 }
  0x6c   : > { %v378_v46 = vmul.f32 1.442695, %v365_v44  ;;  %v373_v53 = vmax.f32 %v371_v48, -16.118095  ;;  %v367_v60 = vmax.f32 %v365_v44, -16.118095 }
  0x6d   : > { %764 = vpow2.f32 %v376_v45  ;;  %v374_v61 = vmin.f32 %v372_v51, -1.0000001e-07  ;;  %v368_v3 = vmin.f32 %v366_v57, -1.0000001e-07 }
  0x6e   : > { %766 = vpow2.f32 %v378_v46  ;;  %v375_v63 = vmin.f32 %v373_v53, -1.0000001e-07  ;;  %v369_v7 = vmin.f32 %v367_v60, -1.0000001e-07 }
  0x7a   : > { %v765_v52 = vpop.eup %764 }
  0x7b   : > { %v767_v54 = vpop.eup %766  ;;  %v380_v56 = vmax.f32 %v765_v52, 1e-07 }
  0x7c   : > { %v381_v59 = vmax.f32 %v767_v54, 1e-07 }
  0x7d   : > { %v382_v62 = vmin.f32 %v380_v56, 0.9999999 }
  0x7e   : > { %v383_v0 = vmin.f32 %v381_v59, 0.9999999 }
  0x7f   : > { %v392_v2 = vmul.f32 %v382_v62, %v382_v62  ;;  %v384_v4 = vsub.f32 1.0, %v382_v62 }
  0x80   : > { %v393_v6 = vmul.f32 %v383_v0, %v383_v0  ;;  %v385_v8 = vsub.f32 1.0, %v383_v0 }
  0x81   : > { %v394_v9 = vmul.f32 %v392_v2, %v374_v61  ;;  %v386_v10 = vmul.f32 %v384_v4, %v384_v4 }
  0x82   : > { %v395_v11 = vmul.f32 %v393_v6, %v375_v63  ;;  %v387_v12 = vmul.f32 %v385_v8, %v385_v8 }
  0x83   : > { %v396_v13 = vmul.f32 %v394_v9, %v342_v1  ;;  %v388_v14 = vmul.f32 %v386_v10, %v368_v3 }
  0x84   : > { %v397_v15 = vmul.f32 %v395_v11, %v343_v5  ;;  %v389_v16 = vmul.f32 %v387_v12, %v369_v7 }
  0x85   : > { %v398_v17 = vmul.f32 %v396_v13, %v1136_v18  ;;  %v390_v19 = vmul.f32 %v388_v14, %v1140_v25 }
  0x86   : > { %v399_v20 = vmul.f32 %v397_v15, %v1138_v22  ;;  %v391_v21 = vmul.f32 %v389_v16, %v1142_v26 }
  0x88   : > { %v427_v23 = vadd.f32 %v399_v20, %v398_v17  ;;  %v423_v24 = vadd.f32 %v391_v21, %v390_v19 }
  0x8a   : > { %428 = vst [vmem:[%s284_s9] sm:$0xff] %v427_v23  ;;  %424 = vst [vmem:[%s277_s26] sm:$0xff] %v423_v24 }
  0x8b   : > { %837 = shalt.err (!%p834_p7)
}
  0x8c   : > { %s838_s9 = scalar_lea.hbm %s1166_s18, 128  ;;  %s842_s25 = scalar_lea.hbm %s1273_s3, 256 }
  0x8d   : > { %p839_p10 = scmp.ne.s32.totalorder %s1166_s18, %s838_s9  ;;  %p843_p3 = scmp.lt.s32.totalorder %s1166_s18, %s1273_s3 }
  0x8e   : > { %p844_p8 = scmp.lt.s32.totalorder %s842_s25, %s838_s9 }
  0x8f   : > { %p840_p1 = pnand %p839_p10, %p1054_p9 }
  0x90   : > { %p845_p0 = por %p844_p8, %p843_p3 }
  0x91   : > { %p841_p13 = pneg %p840_p1 }
  0x93   : > { %p846_p2 = pnand %p845_p0, %p841_p13 }
  0x95   : > { %849 = shalt.err (!%p846_p2)
}
  0x96   : > { %681 = dma.vmem_to_hbm [thread:$0]  (%p1054_p9), %s1156_s11, 128, %s1166_s18, %s1180_s29  }
  0x97   : > { %s434_s14 = scalar_lea.sflag [#allocation7], %s1119_s5  ;;  %s850_s0 = scalar_lea.vmem %s1159_s24, 128 }
  0x98   : > { %p851_p5 = scmp.ne.s32.totalorder %s1159_s24, %s850_s0  ;;  %s972_s27 = smov [#allocation10]  }
  0x99   : > { %s854_s13 = sshll.u32 %s972_s27, 4  ;;  %s855_s13 = int_to_ptr.vmem [resolvable:$false] %s854_s13 }
  0x9a   : > { %p852_p6 = pnand %p851_p5, %p1054_p9  ;;  %s856_s12 = scalar_lea.vmem %s855_s13, 256 }
  0x9b   : > { %p857_p7 = scmp.lt.s32.totalorder %s1159_s24, %s855_s13  ;;  %p858_p10 = scmp.lt.s32.totalorder %s856_s12, %s850_s0 }
  0x9c   : > { %p853_p4 = pneg %p852_p6 }
  0x9d   : > { %p859_p1 = por %p858_p10, %p857_p7 }
  0x9f   : > { %p860_p13 = pnand %p859_p1, %p853_p4 }
  0xa1   : > { %863 = shalt.err (!%p860_p13)
}
  0xa2   : > { %s864_s11 = scalar_lea.hbm %s1171_s7, 128  ;;  %s868_s22 = scalar_lea.hbm %s1272_s2, 256 }
  0xa3   : > { %p865_p3 = scmp.ne.s32.totalorder %s1171_s7, %s864_s11  ;;  %p869_p2 = scmp.lt.s32.totalorder %s1171_s7, %s1272_s2 }
  0xa4   : > { %p870_p5 = scmp.lt.s32.totalorder %s868_s22, %s864_s11 }
  0xa5   : > { %p866_p8 = pnand %p865_p3, %p1054_p9 }
  0xa6   : > { %p871_p6 = por %p870_p5, %p869_p2 }
  0xa7   : > { %p867_p0 = pneg %p866_p8 }
  0xa9   : > { %p872_p4 = pnand %p871_p6, %p867_p0 }
  0xab   : > { %875 = shalt.err (!%p872_p4)
}
  0xac   : > { %680 = dma.vmem_to_hbm [thread:$0]  (%p1054_p9), %s1159_s24, 128, %s1171_s7, %s434_s14  }
  0xad   : > { %s876_s8 = scalar_lea.vmem %s1173_s10, 128  ;;  %s973_s25 = smov [#allocation13]  }
  0xae   : > { %p877_p7 = scmp.ne.s32.totalorder %s1173_s10, %s876_s8  ;;  %s880_s21 = sshll.u32 %s973_s25, 4  ;;  %s881_s21 = int_to_ptr.vmem [resolvable:$false] %s880_s21 }
  0xaf   : > { %s882_s6 = scalar_lea.vmem %s881_s21, 256  ;;  %p883_p13 = scmp.lt.s32.totalorder %s1173_s10, %s881_s21 }
  0xb0   : > { %p878_p10 = pnand %p877_p7, %p1054_p9  ;;  %p884_p3 = scmp.lt.s32.totalorder %s882_s6, %s876_s8 }
  0xb2   : > { %p879_p1 = pneg %p878_p10  ;;  %p885_p8 = por %p884_p3, %p883_p13 }
  0xb4   : > { %p886_p0 = pnand %p885_p8, %p879_p1 }
  0xb6   : > { %889 = shalt.err (!%p886_p0)
}
  0xb7   : > { %s890_s0 = scalar_lea.hbm %s1178_s23, 128  ;;  %s894_s14 = scalar_lea.hbm %s1274_s4, 256 }
  0xb8   : > { %p891_p2 = scmp.ne.s32.totalorder %s1178_s23, %s890_s0  ;;  %p895_p4 = scmp.lt.s32.totalorder %s1178_s23, %s1274_s4 }
  0xb9   : > { %p896_p7 = scmp.lt.s32.totalorder %s894_s14, %s890_s0 }
  0xba   : > { %p892_p5 = pnand %p891_p2, %p1054_p9 }
  0xbb   : > { %p897_p10 = por %p896_p7, %p895_p4 }
  0xbc   : > { %p893_p6 = pneg %p892_p5 }
  0xbe   : > { %p898_p1 = pnand %p897_p10, %p893_p6 }
  0xc0   : > { %901 = shalt.err (!%p898_p1)
}
  0xc1   : > { %682 = dma.vmem_to_hbm [thread:$0]  (%p1054_p9), %s1173_s10, 128, %s1178_s23, %s1180_s29  }
  0xc2 PF: > { %s495_s12 = sand.u32 1, %s944_s15   ;;  %p694_p13 = pnand %p650_p12, %p1063_p11 }
  0xc3   : > { %s496_s11 = scalar_lea.sflag [#allocation7], %s495_s12 }
  0xc4   : > { %p695_p3 = pneg %p694_p13 }
  0xc6   : > { %935 = dma.done.wait (%p695_p3), %s496_s11, 128  }
  0xc7   : > { %937 = vsyncadd (%p695_p3), %s496_s11, 4294967168  ;;  %s1287_s5 = sadd.s32 4294967294, %s964_s20  }
  0xc8   : > { %s504_s18 = sand.u32 1, %s1287_s5  }
  0xc9   : > { %s505_s28 = scalar_lea.sflag [#allocation12], %s504_s18 }
  0xca   : > { %939 = dma.done.wait (%p695_p3), %s505_s28, 256  }
  0xcb   : > { %941 = vsyncadd (%p695_p3), %s505_s28, 4294967040  ;;  %s27_s20 = sadd.s32 1, %s964_s20   ;;  %s1288_s10 = sld [smem:[#allocation19_spill]] }
  0xcc   : > { %p24_p9 = scmp.ge.s32.totalorder %s27_s20, 4   ;;  %s1289_s30 = sld [smem:[#allocation18_spill]] }
  0xcd   : > { %s1290_s15 = smov %s948_s16  ;;  %s1291_s16 = smov %s952_s17 }
  0xce   : > { %s1293_s18 = smov %s960_s19  ;;  %26 = sbr.rel (!%p24_p9) target bundleno = 12 (0xc), region = 126 }
  0xd1   : > { %s1292_s17 = smov %s1288_s10 }
  0xd2   : > { %s1294_s19 = smov %s1289_s30 }
  0xd3   :  { %519 = vsyncpa [#allocation6], 1 }
  0xd4   :  { %521 = vsyncpa [#allocation6 + $0x1], 1 }
  0xd5   :  { %522 = vsyncpa [#allocation9], 1 }
  0xd6   :  { %524 = vsyncpa [#allocation9 + $0x1], 1 }
  0xd7   :  { %525 = vsyncpa [#allocation7], 1 }
  0xd8   :  { %527 = vsyncpa [#allocation7 + $0x1], 1 }
  0xd9   :  { %528 = vsyncpa [#allocation12], 1 }
  0xda   :  { %530 = vsyncpa [#allocation12 + $0x1], 1 }

</bundles_post_ra>
